<compile_context>
chip_gen: v7x
topology: tpu7x:2x2x1
jax: 0.10.0
libtpu: 0.0.40
codegen_flags: <defaults>
</compile_context>

<pallas_src>
import jax
import jax.numpy as jnp
import numpy as np
from jax.experimental import pallas as pl
from jax.experimental.pallas import tpu as pltpu


def _round_up(x, m):
    return ((x + m - 1) // m) * m


def _make_kernel(tb, data_dim, n_layers, compute_dtype):
    TB, D = tb, data_dim

    def kernel(x_ref, *refs):
        # refs = (w_0, b_0, ..., w_{L-1}, b_{L-1}, out_ref)
        w_refs = refs[0:2 * n_layers:2]      # pre-transposed: [in_k, out_k]
        b_refs = refs[1:2 * n_layers:2]      # [1, out_k], float32
        out_ref = refs[2 * n_layers]         # [1, 1, TB]

        # Seed: activations h = x and per-sample Jacobian JT = I, stacked so each
        # layer is ONE MXU matmul:
        #   stacked[:TB]  = h                [TB, in]
        #   stacked[TB:]  = JT (flattened)   [TB*D, in],  JT[b*D+d, j] = d h_j / d x_d
        h0 = x_ref[...].astype(compute_dtype)                          # [TB, D]
        row = jax.lax.broadcasted_iota(jnp.int32, (TB * D, D), 0) % D
        col = jax.lax.broadcasted_iota(jnp.int32, (TB * D, D), 1)
        jt0 = (row == col).astype(compute_dtype)                       # [TB*D, D]
        stacked = jnp.concatenate([h0, jt0], axis=0)                   # [TB*(1+D), D]

        s = None
        jt_final = None
        for k in range(n_layers):
            w = w_refs[k][...]                                         # [in_k, out_k]
            out = jnp.dot(stacked, w, preferred_element_type=jnp.float32)
            pre_h = out[:TB, :] + b_refs[k][...]                       # [TB, out_k]
            jt_k = out[TB:, :]                                         # [TB*D, out_k]
            if k < n_layers - 1:
                # Dense layer: ReLU + its derivative mask (PyTorch convention: 0 at 0).
                out_k = jt_k.shape[-1]
                mask = (pre_h > 0.0).astype(jnp.float32)               # [TB, out_k]
                h_new = pre_h * mask
                # Sublane-repeat the mask (small array); Jacobian stays 2-D.
                mask_rep = jnp.broadcast_to(
                    mask[:, None, :], (TB, D, out_k)).reshape(TB * D, out_k)
                stacked = jnp.concatenate(
                    [h_new, jt_k * mask_rep], axis=0).astype(compute_dtype)
            else:
                # Final plain Linear (no activation).
                s = pre_h                                              # [TB, D]
                jt_final = jt_k                                        # [TB*D, D]

        # Hyvarinen score: 0.5*||s||^2 + trace(ds/dx) per sample.
        eye = (row == col).astype(jnp.float32)                         # diag mask
        tr = jnp.sum((jt_final * eye).reshape(TB, D, D), axis=2)       # [TB, D] diag terms
        combined = 0.5 * s * s + tr                                    # [TB, D]
        # Lane-dense [1, TB] result via a tiny NT matmul (unmasked output store).
        ones_row = jnp.ones((1, D), jnp.float32)
        val_row = jax.lax.dot_general(
            ones_row, combined, (((1,), (1,)), ((), ())),
            preferred_element_type=jnp.float32)                        # [1, TB]
        out_ref[...] = val_row.reshape(1, 1, TB)

    return kernel


def score_matching_forward(x, params, *, block_batch=128, compute_dtype=jnp.float32):
    """params: list of (W [out,in], b [out]) per layer (Dense..., final Linear)."""
    x = jnp.asarray(x, jnp.float32)
    B, D = x.shape
    n_layers = len(params)

    # Batch tile: multiple of 8 sublanes, capped at block_batch.
    TB = _round_up(min(int(block_batch), _round_up(B, 8)), 8)
    B_pad = _round_up(B, TB)
    num_tiles = B_pad // TB
    if B_pad != B:
        x = jnp.pad(x, ((0, B_pad - B), (0, 0)))

    kernel = _make_kernel(TB, D, n_layers, compute_dtype)

    flat_inputs = [x]
    in_specs = [pl.BlockSpec((TB, D), lambda i: (i, 0))]
    w_bytes = 0
    flops = 0
    for (w, b) in params:
        wt = jnp.asarray(w, jnp.float32).T.astype(compute_dtype)       # [in, out]
        b2 = jnp.asarray(b, jnp.float32).reshape(1, -1)                # [1, out]
        flat_inputs += [wt, b2]
        in_specs += [
            pl.BlockSpec(wt.shape, lambda i: (0, 0)),                  # VMEM-resident
            pl.BlockSpec(b2.shape, lambda i: (0, 0)),
        ]
        w_bytes += wt.size * wt.dtype.itemsize + b2.size * b2.dtype.itemsize
        flops += 2 * B_pad * (1 + D) * int(wt.shape[0]) * int(wt.shape[1])

    cost = pl.CostEstimate(
        flops=int(flops),
        transcendentals=0,
        bytes_accessed=int(x.size * x.dtype.itemsize + w_bytes + B_pad * 4),
    )

    out = pl.pallas_call(
        kernel,
        out_shape=jax.ShapeDtypeStruct((num_tiles, 1, TB), jnp.float32),
        grid=(num_tiles,),
        in_specs=in_specs,
        out_specs=pl.BlockSpec((1, 1, TB), lambda i: (i, 0, 0)),
        compiler_params=pltpu.CompilerParams(
            dimension_semantics=("parallel",)),
        cost_estimate=cost,
    )(*flat_inputs)
    return out.reshape(B_pad)[:B]


def init_params(key, data_dim, hidden_layers):
    """Deterministic init mimicking torch.nn.Linear (uniform +/- 1/sqrt(fan_in))."""
    dims = [data_dim] + list(hidden_layers) + [data_dim]
    params = []
    for i in range(len(dims) - 1):
        n_in, n_out = dims[i], dims[i + 1]
        key, kw, kb = jax.random.split(key, 3)
        bound = 1.0 / np.sqrt(n_in)
        w = jax.random.uniform(kw, (n_out, n_in), jnp.float32, -bound, bound)
        b = jax.random.uniform(kb, (n_out,), jnp.float32, -bound, bound)
        params.append((w, b))
    return params


def ref_forward(x, params):
    """Pure-JAX reference (autodiff Jacobian trace) for verification."""
    def score(xi):
        h = xi
        for (w, b) in params[:-1]:
            h = jnp.maximum(h @ w.T + b, 0.0)
        w, b = params[-1]
        return h @ w.T + b

    s = jax.vmap(score)(x)                                # [B, D]
    jac = jax.vmap(jax.jacfwd(score))(x)                  # [B, D, D]
    div = jnp.trace(jac, axis1=1, axis2=2)                # [B]
    return 0.5 * jnp.sum(s * s, axis=1) + div


if __name__ == "__main__":
    data_dim = 4
    hidden_layers = [32, 32]

    key = jax.random.PRNGKey(0)
    kx, kp, kx2 = jax.random.split(key, 3)
    params = init_params(kp, data_dim, hidden_layers)

    # Single-tile case (batch fits one tile).
    batch = 8
    x = jax.random.normal(kx, (batch, data_dim), jnp.float32)
    val = jax.block_until_ready(score_matching_forward(x, params))
    ref = jax.block_until_ready(ref_forward(x, params))
    assert val.shape == (batch,)
    np.testing.assert_allclose(np.asarray(val), np.asarray(ref), rtol=1e-4, atol=1e-4)

    # Multi-tile + padded-batch case (exercises the real grid / pipelining path).
    batch2 = 40
    x2 = jax.random.normal(kx2, (batch2, data_dim), jnp.float32)
    val2 = jax.block_until_ready(score_matching_forward(x2, params, block_batch=16))
    ref2 = jax.block_until_ready(ref_forward(x2, params))
    assert val2.shape == (batch2,)
    np.testing.assert_allclose(np.asarray(val2), np.asarray(ref2), rtol=1e-4, atol=1e-4)

    # TODO(synk): fit()/load()/H_score() are host-side training & checkpoint I/O,
    # out of scope for a forward-pass kernel.
    print("KERNEL_OK")
</pallas_src>

<mosaic_0001>
module attributes {stable_mosaic.version = 11 : i64} {
  func.func @kernel(%arg0: i32, %arg1: memref<8x4xf32, #tpu.memory_space<vmem>>, %arg2: memref<4x32xf32, #tpu.memory_space<vmem>>, %arg3: memref<1x32xf32, #tpu.memory_space<vmem>>, %arg4: memref<32x32xf32, #tpu.memory_space<vmem>>, %arg5: memref<1x32xf32, #tpu.memory_space<vmem>>, %arg6: memref<32x4xf32, #tpu.memory_space<vmem>>, %arg7: memref<1x4xf32, #tpu.memory_space<vmem>>, %arg8: memref<1x1x8xf32, #tpu.memory_space<vmem>>) attributes {dimension_semantics = [#tpu.dimension_semantics<parallel>], iteration_bounds = array<i64: 1>, scalar_prefetch = 0 : i64, scratch_operands = 0 : i64, tpu.core_type = #tpu.core_type<tc>, window_params = [{transform_indices = @transform_0, window_bounds = array<i64: 8, 4>}, {pipeline_mode = #tpu.pipeline_mode<synchronous>, transform_indices = @transform_1, window_bounds = array<i64: 4, 32>}, {pipeline_mode = #tpu.pipeline_mode<synchronous>, transform_indices = @transform_2, window_bounds = array<i64: 1, 32>}, {pipeline_mode = #tpu.pipeline_mode<synchronous>, transform_indices = @transform_3, window_bounds = array<i64: 32, 32>}, {pipeline_mode = #tpu.pipeline_mode<synchronous>, transform_indices = @transform_4, window_bounds = array<i64: 1, 32>}, {pipeline_mode = #tpu.pipeline_mode<synchronous>, transform_indices = @transform_5, window_bounds = array<i64: 32, 4>}, {pipeline_mode = #tpu.pipeline_mode<synchronous>, transform_indices = @transform_6, window_bounds = array<i64: 1, 4>}, {transform_indices = @transform_7, window_bounds = array<i64: 1, 1, 8>}]} {
    %c0 = arith.constant 0 : index
    %c0_0 = arith.constant 0 : index
    %0 = vector.load %arg1[%c0, %c0_0] : memref<8x4xf32, #tpu.memory_space<vmem>>, vector<8x4xf32>
    %1 = tpu.iota {dimensions = array<i32: 0>} : vector<32x4xi32>
    %c4_i32 = arith.constant 4 : i32
    %c0_i32 = arith.constant 0 : i32
    %2 = arith.cmpi eq, %c4_i32, %c0_i32 : i32
    %c1_i32 = arith.constant 1 : i32
    %3 = arith.select %2, %c1_i32, %c4_i32 : i32
    %4 = vector.broadcast %3 : i32 to vector<32x4xi32>
    %5 = arith.remsi %1, %4 : vector<32x4xi32>
    %c0_i32_1 = arith.constant 0 : i32
    %6 = vector.broadcast %c0_i32_1 : i32 to vector<32x4xi32>
    %7 = arith.cmpi ne, %5, %6 : vector<32x4xi32>
    %c0_i32_2 = arith.constant 0 : i32
    %8 = vector.broadcast %c0_i32_2 : i32 to vector<32x4xi32>
    %9 = arith.cmpi slt, %5, %8 : vector<32x4xi32>
    %c0_i32_3 = arith.constant 0 : i32
    %10 = arith.cmpi slt, %3, %c0_i32_3 : i32
    %11 = vector.broadcast %10 : i1 to vector<32x4xi1>
    %12 = vector.broadcast %11 : vector<32x4xi1> to vector<32x4xi1>
    %13 = arith.xori %9, %12 : vector<32x4xi1>
    %14 = arith.andi %13, %7 : vector<32x4xi1>
    %15 = vector.broadcast %3 : i32 to vector<32x4xi32>
    %16 = arith.addi %5, %15 : vector<32x4xi32>
    %17 = arith.select %14, %16, %5 : vector<32x4xi1>, vector<32x4xi32>
    %18 = tpu.iota {dimensions = array<i32: 1>} : vector<32x4xi32>
    %19 = arith.cmpi eq, %17, %18 : vector<32x4xi32>
    %20 = arith.extui %19 : vector<32x4xi1> to vector<32x4xi32>
    %21 = arith.sitofp %20 : vector<32x4xi32> to vector<32x4xf32>
    %22 = tpu.concatenate %0, %21 in 0 : vector<8x4xf32>, vector<32x4xf32> -> vector<40x4xf32>
    %c0_4 = arith.constant 0 : index
    %c0_5 = arith.constant 0 : index
    %23 = vector.load %arg2[%c0_4, %c0_5] : memref<4x32xf32, #tpu.memory_space<vmem>>, vector<4x32xf32>
    %cst = arith.constant dense<0.000000e+00> : vector<40x32xf32>
    %24 = tpu.matmul %22, %23, %cst {dimension_numbers = #tpu.dot_dimension_numbers<[1], [0], [0], [1], [0, 0, 1, 1], [], []>} : vector<40x4xf32>, vector<4x32xf32>, vector<40x32xf32> -> vector<40x32xf32>
    %25 = vector.extract_strided_slice %24 {offsets = [0, 0], sizes = [8, 32], strides = [1, 1]} : vector<40x32xf32> to vector<8x32xf32>
    %c0_6 = arith.constant 0 : index
    %c0_7 = arith.constant 0 : index
    %26 = vector.load %arg3[%c0_6, %c0_7] : memref<1x32xf32, #tpu.memory_space<vmem>>, vector<1x32xf32>
    %27 = vector.broadcast %26 : vector<1x32xf32> to vector<8x32xf32>
    %28 = arith.addf %25, %27 : vector<8x32xf32>
    %29 = vector.extract_strided_slice %24 {offsets = [8, 0], sizes = [32, 32], strides = [1, 1]} : vector<40x32xf32> to vector<32x32xf32>
    %cst_8 = arith.constant 0.000000e+00 : f32
    %30 = vector.broadcast %cst_8 : f32 to vector<8x32xf32>
    %31 = arith.cmpf ogt, %28, %30 : vector<8x32xf32>
    %32 = arith.extui %31 : vector<8x32xi1> to vector<8x32xi32>
    %33 = arith.sitofp %32 : vector<8x32xi32> to vector<8x32xf32>
    %34 = arith.mulf %28, %33 : vector<8x32xf32>
    %35 = vector.shape_cast %33 : vector<8x32xf32> to vector<8x1x32xf32>
    %36 = vector.shape_cast %35 : vector<8x1x32xf32> to vector<8x1x32xf32>
    %37 = vector.broadcast %36 : vector<8x1x32xf32> to vector<8x4x32xf32>
    %38 = vector.shape_cast %37 : vector<8x4x32xf32> to vector<32x32xf32>
    %39 = arith.mulf %29, %38 : vector<32x32xf32>
    %40 = tpu.concatenate %34, %39 in 0 : vector<8x32xf32>, vector<32x32xf32> -> vector<40x32xf32>
    %c0_9 = arith.constant 0 : index
    %c0_10 = arith.constant 0 : index
    %41 = vector.load %arg4[%c0_9, %c0_10] : memref<32x32xf32, #tpu.memory_space<vmem>>, vector<32x32xf32>
    %cst_11 = arith.constant dense<0.000000e+00> : vector<40x32xf32>
    %42 = tpu.matmul %40, %41, %cst_11 {dimension_numbers = #tpu.dot_dimension_numbers<[1], [0], [0], [1], [0, 0, 1, 1], [], []>} : vector<40x32xf32>, vector<32x32xf32>, vector<40x32xf32> -> vector<40x32xf32>
    %43 = vector.extract_strided_slice %42 {offsets = [0, 0], sizes = [8, 32], strides = [1, 1]} : vector<40x32xf32> to vector<8x32xf32>
    %c0_12 = arith.constant 0 : index
    %c0_13 = arith.constant 0 : index
    %44 = vector.load %arg5[%c0_12, %c0_13] : memref<1x32xf32, #tpu.memory_space<vmem>>, vector<1x32xf32>
    %45 = vector.broadcast %44 : vector<1x32xf32> to vector<8x32xf32>
    %46 = arith.addf %43, %45 : vector<8x32xf32>
    %47 = vector.extract_strided_slice %42 {offsets = [8, 0], sizes = [32, 32], strides = [1, 1]} : vector<40x32xf32> to vector<32x32xf32>
    %cst_14 = arith.constant 0.000000e+00 : f32
    %48 = vector.broadcast %cst_14 : f32 to vector<8x32xf32>
    %49 = arith.cmpf ogt, %46, %48 : vector<8x32xf32>
    %50 = arith.extui %49 : vector<8x32xi1> to vector<8x32xi32>
    %51 = arith.sitofp %50 : vector<8x32xi32> to vector<8x32xf32>
    %52 = arith.mulf %46, %51 : vector<8x32xf32>
    %53 = vector.shape_cast %51 : vector<8x32xf32> to vector<8x1x32xf32>
    %54 = vector.shape_cast %53 : vector<8x1x32xf32> to vector<8x1x32xf32>
    %55 = vector.broadcast %54 : vector<8x1x32xf32> to vector<8x4x32xf32>
    %56 = vector.shape_cast %55 : vector<8x4x32xf32> to vector<32x32xf32>
    %57 = arith.mulf %47, %56 : vector<32x32xf32>
    %58 = tpu.concatenate %52, %57 in 0 : vector<8x32xf32>, vector<32x32xf32> -> vector<40x32xf32>
    %c0_15 = arith.constant 0 : index
    %c0_16 = arith.constant 0 : index
    %59 = vector.load %arg6[%c0_15, %c0_16] : memref<32x4xf32, #tpu.memory_space<vmem>>, vector<32x4xf32>
    %cst_17 = arith.constant dense<0.000000e+00> : vector<40x4xf32>
    %60 = tpu.matmul %58, %59, %cst_17 {dimension_numbers = #tpu.dot_dimension_numbers<[1], [0], [0], [1], [0, 0, 1, 1], [], []>} : vector<40x32xf32>, vector<32x4xf32>, vector<40x4xf32> -> vector<40x4xf32>
    %61 = vector.extract_strided_slice %60 {offsets = [0, 0], sizes = [8, 4], strides = [1, 1]} : vector<40x4xf32> to vector<8x4xf32>
    %c0_18 = arith.constant 0 : index
    %c0_19 = arith.constant 0 : index
    %62 = vector.load %arg7[%c0_18, %c0_19] : memref<1x4xf32, #tpu.memory_space<vmem>>, vector<1x4xf32>
    %63 = vector.broadcast %62 : vector<1x4xf32> to vector<8x4xf32>
    %64 = arith.addf %61, %63 : vector<8x4xf32>
    %65 = vector.extract_strided_slice %60 {offsets = [8, 0], sizes = [32, 4], strides = [1, 1]} : vector<40x4xf32> to vector<32x4xf32>
    %66 = arith.cmpi eq, %17, %18 : vector<32x4xi32>
    %67 = arith.extui %66 : vector<32x4xi1> to vector<32x4xi32>
    %68 = arith.sitofp %67 : vector<32x4xi32> to vector<32x4xf32>
    %69 = arith.mulf %65, %68 : vector<32x4xf32>
    %70 = vector.shape_cast %69 : vector<32x4xf32> to vector<8x4x4xf32>
    %cst_20 = arith.constant dense<0.000000e+00> : vector<8x4xf32>
    %71 = vector.multi_reduction <add>, %70, %cst_20 [2] : vector<8x4x4xf32> to vector<8x4xf32>
    %cst_21 = arith.constant 5.000000e-01 : f32
    %72 = vector.broadcast %cst_21 : f32 to vector<8x4xf32>
    %73 = arith.mulf %72, %64 : vector<8x4xf32>
    %74 = arith.mulf %73, %64 : vector<8x4xf32>
    %75 = arith.addf %74, %71 : vector<8x4xf32>
    %cst_22 = arith.constant 1.000000e+00 : f32
    %76 = vector.broadcast %cst_22 : f32 to vector<1x4xf32>
    %cst_23 = arith.constant dense<0.000000e+00> : vector<1x8xf32>
    %77 = tpu.matmul %76, %75, %cst_23 {dimension_numbers = #tpu.dot_dimension_numbers<[1], [1], [0], [0], [0, 0, 1, 0], [], []>} : vector<1x4xf32>, vector<8x4xf32>, vector<1x8xf32> -> vector<1x8xf32>
    %78 = vector.shape_cast %77 : vector<1x8xf32> to vector<1x1x8xf32>
    %c0_24 = arith.constant 0 : index
    %c0_25 = arith.constant 0 : index
    %c0_26 = arith.constant 0 : index
    %79 = vector.load %arg8[%c0_24, %c0_25, %c0_26] : memref<1x1x8xf32, #tpu.memory_space<vmem>>, vector<1x1x8xf32>
    tpu.vector_store %arg8[%c0_24, %c0_25, %c0_26], %78 {strides = array<i32>} : memref<1x1x8xf32, #tpu.memory_space<vmem>>, vector<1x1x8xf32>,
    return
  }
  func.func @transform_0(%arg0: i32) -> (i32, i32) {
    %c0_i32 = arith.constant 0 : i32
    %c0_i32_0 = arith.constant 0 : i32
    return %arg0, %c0_i32 : i32, i32
  }
  func.func @transform_1(%arg0: i32) -> (i32, i32) {
    %c0_i32 = arith.constant 0 : i32
    %c0_i32_0 = arith.constant 0 : i32
    %c0_i32_1 = arith.constant 0 : i32
    return %c0_i32, %c0_i32_0 : i32, i32
  }
  func.func @transform_2(%arg0: i32) -> (i32, i32) {
    %c0_i32 = arith.constant 0 : i32
    %c0_i32_0 = arith.constant 0 : i32
    %c0_i32_1 = arith.constant 0 : i32
    return %c0_i32, %c0_i32_0 : i32, i32
  }
  func.func @transform_3(%arg0: i32) -> (i32, i32) {
    %c0_i32 = arith.constant 0 : i32
    %c0_i32_0 = arith.constant 0 : i32
    %c0_i32_1 = arith.constant 0 : i32
    return %c0_i32, %c0_i32_0 : i32, i32
  }
  func.func @transform_4(%arg0: i32) -> (i32, i32) {
    %c0_i32 = arith.constant 0 : i32
    %c0_i32_0 = arith.constant 0 : i32
    %c0_i32_1 = arith.constant 0 : i32
    return %c0_i32, %c0_i32_0 : i32, i32
  }
  func.func @transform_5(%arg0: i32) -> (i32, i32) {
    %c0_i32 = arith.constant 0 : i32
    %c0_i32_0 = arith.constant 0 : i32
    %c0_i32_1 = arith.constant 0 : i32
    return %c0_i32, %c0_i32_0 : i32, i32
  }
  func.func @transform_6(%arg0: i32) -> (i32, i32) {
    %c0_i32 = arith.constant 0 : i32
    %c0_i32_0 = arith.constant 0 : i32
    %c0_i32_1 = arith.constant 0 : i32
    return %c0_i32, %c0_i32_0 : i32, i32
  }
  func.func @transform_7(%arg0: i32) -> (i32, i32, i32) {
    %c0_i32 = arith.constant 0 : i32
    %c0_i32_0 = arith.constant 0 : i32
    %c0_i32_1 = arith.constant 0 : i32
    return %arg0, %c0_i32, %c0_i32_0 : i32, i32, i32
  }
}

</mosaic_0001>

<bundles_post_ra>
// kernel: tpu_custom_call.1
= control target key start
LH: loop header
LB: loop body
LE: loop exit
PB: predicated region body
PF: predicated region fallthrough
CT: control target
= control target key end

     0   :  { %vm112_vm0 = vcmask 1043456   ;;  %v28_v2 = vlaneseq  ;;  %v1001_v3 = vmov 0.0   ;;  %vm1002_vm1 = vmmov 0   ;;  %s1226_s0 = inlined_call_operand.vmem [shape: f32[8,4], index: 0, kind: input, shape index: {}]   ;;  %s1227_s1 = inlined_call_operand.vmem [shape: f32[4,32], index: 1, kind: input, shape index: {}]   ;;  %s1228_s2 = inlined_call_operand.vmem [shape: f32[1,32], index: 2, kind: input, shape index: {}]   ;;  %s1229_s3 = inlined_call_operand.vmem [shape: f32[32,32], index: 3, kind: input, shape index: {}]   ;;  %s1230_s4 = inlined_call_operand.vmem [shape: f32[1,32], index: 4, kind: input, shape index: {}]   ;;  %s1231_s5 = inlined_call_operand.vmem [shape: f32[32,4], index: 5, kind: input, shape index: {}]   ;;  %s1232_s6 = inlined_call_operand.vmem [shape: f32[1,4], index: 6, kind: input, shape index: {}]   ;;  %s1233_s7 = inlined_call_operand.hbm [shape: f32[1,1,8], index: 7, kind: output, shape index: {}]  }
   0x1   :  { %v95_v0 = vld [vmem:[%s1227_s1] sm:$0xf]  ;;  %889 = vmatprep.subr.mxu0 %v1001_v3  ;;  %891 = vmatprep.mubr.msk.f32.mxu0 %vm1002_vm1, %v1001_v3  ;;  %vm96_vm2 = vcmask 31744  }
   0x2   :  { %v27_v1 = vld [vmem:[%s1226_s0] sm:$0xff] }
   0x3   :  { %12 = vsyncpa [#allocation3], 0  ;;  %890 = vmatpush3.msk.msra.mxu0 %vm112_vm0, %v95_v0  ;;  %969 = vmatprep.subr.mxu1 %v1001_v3  ;;  %v29_v4 = vshrl.u32 %v28_v2, 7  ;;  %v82_v5 = vand.u32 127, %v28_v2  ;;  %v1003_v11 = vmov 0.0|0.0   ;;  %v312_v19 = vld [vmem:[%s1229_s3] sm:$0xff] }
   0x4   :  { %892 = vmatmul.mubr.msk.f32.vlgmr.msra.gmra.mrb[0].mxu0 %vm96_vm2, %v27_v1  ;;  %970 = vmatpush3.msk.msra.mxu1 %vm112_vm0, %v95_v0  ;;  %v313_v20 = vld [vmem:[%s1229_s3 + $0x8] sm:$0xff]  ;;  %v314_v22 = vld [vmem:[%s1229_s3 + $0x10] sm:$0xff]  ;;  %v315_v23 = vld [vmem:[%s1229_s3 + $0x18] sm:$0xff]  ;;  %v1004_v25 = vmov 1966171168   ;;  %vm316_vm8 = vcmask 261120  }
   0x5   :  { %894 = vmatprep.mubr.msk.f32.mxu0 %vm1002_vm1, %v1001_v3  ;;  %v37_v6 = vand.u32 3, %v29_v4  ;;  %v1060_v7 = vsub.s32 %v82_v5, %v29_v4  ;;  %900 = vmatprep.mubr.msk.f32.mxu1 %vm1002_vm1, %v1001_v3  ;;  %v31_v8 = vadd.s32 16, %v29_v4  ;;  %v30_v9 = vadd.s32 8, %v29_v4  ;;  %v846_v28 = vld [vmem:[%s1228_s2] ss:$0 sm:$0xff] }
   0x6   :  { %v32_v10 = vadd.s32 24, %v29_v4  ;;  %957 = vmatprep.subr.bf16.mxu1 %v1003_v11  ;;  %963 = vmatprep.subr.bf16.mxu0 %v1003_v11  ;;  %v958_v21 = vpack.c.bf16 %v313_v20, %v312_v19  ;;  %v961_v24 = vpack.c.bf16 %v315_v23, %v314_v22  ;;  %v221_v26 = vunpack.c.l.s4 %v1004_v25  ;;  %v530_v19 = vld [vmem:[%s1231_s5 + $0x10] sm:$0xff]  ;;  %v531_v20 = vld [vmem:[%s1231_s5 + $0x18] sm:$0xff]  ;;  %v853_v22 = vld [vmem:[%s1230_s4] ss:$0 sm:$0xff] }
   0x7   :  { %vm83_vm3 = vcmp.eq.s32.totalorder %v37_v6, %v82_v5  ;;  %v51_v13 = vand.u32 3, %v31_v8  ;;  %v44_v14 = vand.u32 3, %v30_v9  ;;  %v1115_v39 = vsub.s32 0, %v29_v4 }
   0x8   :  { %v1067_v12 = vsel %vm83_vm3, 1.0, %v1001_v3  ;;  %v58_v15 = vand.u32 3, %v32_v10  ;;  %v222_v27 = vunpack.c.0.s8 %v221_v26  ;;  %vm661_vm10 = vcmask 27648  }
   0x9   :  { %895 = vmatmul.mubr.msk.f32.gmra.mrb[2].mxu0 %vm96_vm2, %v1067_v12  ;;  %vm85_vm4 = vcmp.eq.s32.totalorder %v51_v13, %v82_v5  ;;  %vm84_vm5 = vcmp.eq.s32.totalorder %v44_v14, %v82_v5  ;;  %v528_v13 = vld [vmem:[%s1231_s5] sm:$0xff]  ;;  %v529_v14 = vld [vmem:[%s1231_s5 + $0x8] sm:$0xff]  ;;  %vm728_vm11 = vcmask 1041409   ;;  %vm730_vm12 = vcmask 1042434  }
   0xa   :  { %897 = vmatprep.mubr.msk.f32.mxu0 %vm1002_vm1, %v1001_v3  ;;  %vm86_vm6 = vcmp.eq.s32.totalorder %v58_v15, %v82_v5  ;;  %v1074_v16 = vsel %vm85_vm4, 1.0, %v1001_v3  ;;  %v1077_v17 = vsel %vm84_vm5, 1.0, %v1001_v3  ;;  %v1111_v30 = vsub.s32 %v222_v27, %v29_v4 }
   0xb   :  { %901 = vmatmul.mubr.msk.f32.vlgmr.msra.gmra.mrb[0].mxu1 %vm96_vm2, %v1074_v16  ;;  %v1086_v18 = vsel %vm86_vm6, 1.0, %v1001_v3  ;;  %v964_v15 = vpack.c.bf16 %v529_v14, %v528_v13  ;;  %vm732_vm13 = vcmask 1043459   ;;  %vm734_vm14 = vcmask 1044484  }
   0xc   :  { %903 = vmatprep.mubr.msk.f32.mxu1 %vm1002_vm1, %v1001_v3  ;;  %959 = vmatpush3.bf16.msra.mxu1 %v958_v21  ;;  %v967_v21 = vpack.c.bf16 %v531_v20, %v530_v19  ;;  %vm736_vm15 = vcmask 1045509   ;;  %vm738_vm0 = vcmask 1046534   ;;  %vm820_vm3 = vcmask 57344  }
   0xd   :  { %898 = vmatmul.mubr.msk.f32.gmra.mrb[4].mxu0 %vm96_vm2, %v1077_v17  ;;  %960 = vmatprep.subr.bf16.mxu1 %v1003_v11 }
   0xe   :  { %937 = vmatprep.mubr.msk.f32.mxu0 %vm1002_vm1, %v1001_v3  ;;  %965 = vmatpush3.bf16.msra.mxu0 %v964_v15 }
   0xf   :  { %904 = vmatmul.mubr.msk.f32.gmra.mrb[2].mxu1 %vm96_vm2, %v1086_v18  ;;  %966 = vmatprep.subr.bf16.mxu0 %v1003_v11 }
  0x10   :  { %914 = vmatprep.mubr.msk.f32.mxu1 %vm1002_vm1, %v1001_v3  ;;  %962 = vmatpush3.bf16.msra.mxu1 %v961_v24 }
  0x11   :  { %952 = vmatprep.subr.mxu1 %v1001_v3 }
  0x12   :  { %968 = vmatpush3.bf16.msra.mxu0 %v967_v21 }
  0xd7   :  { %v182_v29 = vpop.f32.mrb[0].mxu0 }
  0xd8   :  { %v213_v31 = vadd.f32 %v846_v28, %v182_v29  ;;  %v893_v32 = vpop.f32.mrb[1].mxu0 }
  0xda   :  { %vm214_vm7 = vcmp.gt.f32.partialorder %v213_v31, 0.0 }
  0xdb   :  { %v847_v33 = vsel %vm214_vm7, 1.0, %v1001_v3 }
  0xdc   :  { %v217_v34 = vmul.f32 %v847_v33, %v213_v31  ;;  %v219_v35 = vcombine.high %v847_v33, %v847_v33  ;;  %v226_v36 = vrot.slane %v847_v33, %v1111_v30  ;;  %v187_v37 = vpop.f32.mrb[2].mxu0 }
  0xdd   :  { %v896_v38 = vpop.f32.mrb[3].mxu0 }
  0xde   :  { %v233_v40 = vrot.slane %v219_v35, %v1111_v30  ;;  %v234_v41 = vcombine.high %v226_v36, %v226_v36  ;;  %915 = vmatmul.mubr.msk.f32.vlgmr.msra.gmra.mrb[4].mxu1 %vm316_vm8, %v217_v34  ;;  %v242_v42 = vrot.slane %v226_v36, %v1111_v30  ;;  %v197_v43 = vpop.f32.mrb[0].mxu1 }
  0xdf   :  { %917 = vmatprep.mubr.msk.f32.mxu1 %vm1002_vm1, %v1001_v3  ;;  %v902_v48 = vpop.f32.mrb[1].mxu1 }
  0xe0   :  { %v256_v44 = vrot.slane %v234_v41, %v1111_v30  ;;  %v192_v45 = vpop.f32.mrb[4].mxu0  ;;  %v264_v46 = vcombine.high %v242_v42, %v242_v42  ;;  %v235_v47 = vcombine.high %v233_v40, %v233_v40  ;;  %v249_v49 = vrot.slane %v233_v40, %v1111_v30 }
  0xe1   :  { %v899_v50 = vpop.f32.mrb[5].mxu0  ;;  %v271_v51 = vrot.slane %v242_v42, %v1115_v39 }
  0xe2   :  { %v275_v52 = vrot.slane %v256_v44, %v1115_v39  ;;  %v266_v53 = vcombine.high %v256_v44, %v256_v44  ;;  %v263_v54 = vrot.slane %v235_v47, %v1111_v30  ;;  %v279_v55 = vrot.slane %v264_v46, %v1115_v39  ;;  %v202_v57 = vpop.f32.mrb[2].mxu1 }
  0xe3   :  { %v287_v56 = vrot.slane %v249_v49, %v1115_v39  ;;  %v265_v58 = vcombine.high %v249_v49, %v249_v49  ;;  %v905_v63 = vpop.f32.mrb[3].mxu1 }
  0xe4   :  { %v300_v59 = vcombine.low %v271_v51, %v275_v52  ;;  %v283_v60 = vrot.slane %v266_v53, %v1115_v39  ;;  %v291_v61 = vrot.slane %v263_v54, %v1115_v39  ;;  %v267_v62 = vcombine.high %v263_v54, %v263_v54 }
  0xe5   :  { %v295_v0 = vrot.slane %v265_v58, %v1115_v39 }
  0xe6   :  { %v308_v1 = vmul.f32 %v300_v59, %v187_v37  ;;  %v301_v2 = vcombine.low %v279_v55, %v283_v60  ;;  %v302_v4 = vcombine.low %v287_v56, %v291_v61  ;;  %v299_v5 = vrot.slane %v267_v62, %v1115_v39 }
  0xe8   :  { %v309_v6 = vmul.f32 %v301_v2, %v192_v45  ;;  %v310_v8 = vmul.f32 %v302_v4, %v197_v43  ;;  %918 = vmatmul.mubr.msk.f32.gmra.mrb[6].mxu1 %vm316_vm8, %v308_v1  ;;  %v303_v9 = vcombine.low %v295_v0, %v299_v5 }
  0xe9   :  { %920 = vmatprep.mubr.msk.f32.mxu1 %vm1002_vm1, %v1001_v3 }
  0xea   :  { %v311_v10 = vmul.f32 %v303_v9, %v202_v57 }
  0xec   :  { %921 = vmatmul.mubr.msk.f32.gmra.mrb[8].mxu1 %vm316_vm8, %v309_v6 }
  0xed   :  { %923 = vmatprep.mubr.msk.f32.mxu1 %vm1002_vm1, %v1001_v3 }
  0xf0   :  { %924 = vmatmul.mubr.msk.f32.gmra.mrb[10].mxu1 %vm316_vm8, %v310_v8 }
  0xf1   :  { %926 = vmatprep.mubr.msk.f32.mxu1 %vm1002_vm1, %v1001_v3 }
  0xf4   :  { %927 = vmatmul.mubr.msk.f32.gmra.mrb[12].mxu1 %vm316_vm8, %v311_v10 }
  0xf5   :  { %954 = vmatprep.mubr.msk.f32.mxu1 %vm1002_vm1, %v1001_v3 }
 0x1b1   :  { %v398_v23 = vpop.f32.mrb[4].mxu1 }
 0x1b2   :  { %v429_v24 = vadd.f32 %v853_v22, %v398_v23  ;;  %v916_v25 = vpop.f32.mrb[5].mxu1 }
 0x1b4   :  { %vm430_vm9 = vcmp.gt.f32.partialorder %v429_v24, 0.0 }
 0x1b5   :  { %v854_v11 = vsel %vm430_vm9, 1.0, %v1001_v3 }
 0x1b6   :  { %v433_v26 = vmul.f32 %v854_v11, %v429_v24  ;;  %v435_v27 = vcombine.high %v854_v11, %v854_v11  ;;  %v442_v28 = vrot.slane %v854_v11, %v1111_v30 }
 0x1b8   :  { %v449_v29 = vrot.slane %v435_v27, %v1111_v30  ;;  %v450_v31 = vcombine.high %v442_v28, %v442_v28  ;;  %938 = vmatmul.mubr.msk.f32.vlgmr.msra.gmra.mrb[6].mxu0 %vm316_vm8, %v433_v26  ;;  %v458_v32 = vrot.slane %v442_v28, %v1111_v30 }
 0x1b9   :  { %940 = vmatprep.mubr.msk.f32.mxu0 %vm1002_vm1, %v1001_v3 }
 0x1ba   :  { %v472_v33 = vrot.slane %v450_v31, %v1111_v30  ;;  %v480_v34 = vcombine.high %v458_v32, %v458_v32  ;;  %v451_v35 = vcombine.high %v449_v29, %v449_v29  ;;  %v487_v37 = vrot.slane %v458_v32, %v1115_v39 }
 0x1bb   :  { %v403_v36 = vpop.f32.mrb[6].mxu1  ;;  %v465_v42 = vrot.slane %v449_v29, %v1111_v30 }
 0x1bc   :  { %v491_v38 = vrot.slane %v472_v33, %v1115_v39  ;;  %v919_v40 = vpop.f32.mrb[7].mxu1  ;;  %v482_v41 = vcombine.high %v472_v33, %v472_v33  ;;  %v479_v43 = vrot.slane %v451_v35, %v1111_v30  ;;  %v495_v44 = vrot.slane %v480_v34, %v1115_v39  ;;  %v860_v34 = vld [vmem:[%s1232_s6] ss:$0 sm:$0xff]  ;;  %s1006_s6 = smov [#allocation2]  }
 0x1bd   :  { %v503_v53 = vrot.slane %v465_v42, %v1115_v39  ;;  %v481_v54 = vcombine.high %v465_v42, %v465_v42  ;;  %s828_s21 = sshll.u32 %s1006_s6, 4  ;;  %s829_s21 = int_to_ptr.vmem [resolvable:$true] %s828_s21 }
 0x1be   :  { %v516_v45 = vcombine.low %v487_v37, %v491_v38  ;;  %v499_v46 = vrot.slane %v482_v41, %v1115_v39  ;;  %v507_v47 = vrot.slane %v479_v43, %v1115_v39  ;;  %v483_v48 = vcombine.high %v479_v43, %v479_v43  ;;  %s977_s22 = scalar_lea.vmem %s829_s21, 16  ;;  %s981_s23 = scalar_lea.vmem %s829_s21, 32 }
 0x1bf   :  { %v408_v49 = vpop.f32.mrb[8].mxu1  ;;  %v511_v60 = vrot.slane %v481_v54, %v1115_v39  ;;  %p978_p0 = scmp.ne.s32.totalorder %s829_s21, %s977_s22  ;;  %p982_p1 = scmp.lt.s32.totalorder %s829_s21, %s829_s21 }
 0x1c0   :  { %v524_v50 = vmul.f32 %v516_v45, %v403_v36  ;;  %v517_v51 = vcombine.low %v495_v44, %v499_v46  ;;  %v922_v52 = vpop.f32.mrb[9].mxu1  ;;  %v518_v56 = vcombine.low %v503_v53, %v507_v47  ;;  %v515_v30 = vrot.slane %v483_v48, %v1115_v39  ;;  %p983_p2 = scmp.lt.s32.totalorder %s981_s23, %s977_s22 }
 0x1c2   :  { %v525_v55 = vmul.f32 %v517_v51, %v408_v49  ;;  %941 = vmatmul.mubr.msk.f32.gmra.mrb[8].mxu0 %vm316_vm8, %v524_v50  ;;  %v519_v61 = vcombine.low %v511_v60, %v515_v30  ;;  %v1005_v30 = vmov 1.0   ;;  %p984_p3 = por %p983_p2, %p982_p1 }
 0x1c3   :  { %v413_v57 = vpop.f32.mrb[10].mxu1  ;;  %943 = vmatprep.mubr.msk.f32.mxu0 %vm1002_vm1, %v1001_v3 }
 0x1c4   :  { %v526_v58 = vmul.f32 %v518_v56, %v413_v57  ;;  %v925_v59 = vpop.f32.mrb[11].mxu1  ;;  %p985_p4 = pnand %p984_p3, %p978_p0 }
 0x1c6   :  { %944 = vmatmul.mubr.msk.f32.gmra.mrb[10].mxu0 %vm316_vm8, %v525_v55 }
 0x1c7   :  { %v418_v62 = vpop.f32.mrb[12].mxu1  ;;  %946 = vmatprep.mubr.msk.f32.mxu0 %vm1002_vm1, %v1001_v3 }
 0x1c8   :  { %v527_v63 = vmul.f32 %v519_v61, %v418_v62  ;;  %v928_v0 = vpop.f32.mrb[13].mxu1 }
 0x1ca   :  { %947 = vmatmul.mubr.msk.f32.gmra.mrb[12].mxu0 %vm316_vm8, %v526_v58 }
 0x1cb   :  { %949 = vmatprep.mubr.msk.f32.mxu0 %vm1002_vm1, %v1001_v3  ;;  %vm740_vm1 = vcmask 1047559  }
 0x1ce   :  { %950 = vmatmul.mubr.msk.f32.gmra.mrb[14].mxu0 %vm316_vm8, %v527_v63 }
 0x28b   :  { %v613_v1 = vpop.f32.mrb[6].mxu0 }
 0x28c   :  { %v939_v2 = vpop.f32.mrb[7].mxu0  ;;  %v644_v40 = vadd.f32 %v860_v34, %v613_v1 }
 0x28e   :  { %v686_v47 = vmul.f32 0.5, %v644_v40 }
 0x290   :  { %v687_v53 = vmul.f32 %v686_v47, %v644_v40 }
 0x295   :  { %v618_v4 = vpop.f32.mrb[8].mxu0 }
 0x296   :  { %v645_v39 = vmul.f32 %v1067_v12, %v618_v4  ;;  %v942_v5 = vpop.f32.mrb[9].mxu0 }
 0x298   :  { %v662_v6 = vsel %vm661_vm10, %v645_v39, 0.0  ;;  %v653_v8 = vcombine.high %v645_v39, %v645_v39 }
 0x299   :  { %663 = vadd.xlane.f32.xlu0 %v662_v6  ;;  %v623_v9 = vpop.f32.mrb[10].mxu0 }
 0x29a   :  { %v646_v10 = vmul.f32 %v1077_v17, %v623_v9  ;;  %v945_v13 = vpop.f32.mrb[11].mxu0  ;;  %v665_v14 = vsel %vm661_vm10, %v653_v8, 0.0 }
 0x29c   :  { %v668_v3 = vsel %vm661_vm10, %v646_v10, 0.0  ;;  %v654_v15 = vcombine.high %v646_v10, %v646_v10 }
 0x29d   :  { %666 = vadd.xlane.f32.xlu0 %v665_v14  ;;  %669 = vadd.xlane.f32.xlu1 %v668_v3  ;;  %v628_v19 = vpop.f32.mrb[12].mxu0 }
 0x29e   :  { %v647_v20 = vmul.f32 %v1074_v16, %v628_v19  ;;  %v948_v12 = vpop.f32.mrb[13].mxu0  ;;  %v671_v21 = vsel %vm661_vm10, %v654_v15, 0.0 }
 0x2a0   :  { %v674_v22 = vsel %vm661_vm10, %v647_v20, 0.0  ;;  %v655_v23 = vcombine.high %v647_v20, %v647_v20 }
 0x2a1   :  { %672 = vadd.xlane.f32.xlu1 %v671_v21  ;;  %675 = vadd.xlane.f32.xlu0 %v674_v22  ;;  %v633_v17 = vpop.f32.mrb[14].mxu0 }
 0x2a2   :  { %v648_v24 = vmul.f32 %v1086_v18, %v633_v17  ;;  %v951_v25 = vpop.f32.mrb[15].mxu0  ;;  %v677_v11 = vsel %vm661_vm10, %v655_v23, 0.0 }
 0x2a4   :  { %v680_v26 = vsel %vm661_vm10, %v648_v24, 0.0  ;;  %v656_v27 = vcombine.high %v648_v24, %v648_v24 }
 0x2a5   :  { %678 = vadd.xlane.f32.xlu1 %v677_v11  ;;  %681 = vadd.xlane.f32.xlu0 %v680_v26 }
 0x2a6   :  { %v683_v16 = vsel %vm661_vm10, %v656_v27, 0.0 }
 0x2a9   :  { %684 = vadd.xlane.f32.xlu1 %v683_v16 }
 0x326   :  { %v664_v28 = vpop.xlane.xlu0 %663 }
 0x327   :  { %v699_v32 = vrot.slane %v664_v28, %v1060_v7 }
 0x32a   :  { %v667_v29 = vpop.xlane.xlu0 %666  ;;  %v670_v31 = vpop.xlane.xlu1 %669 }
 0x32b   :  { %v703_v33 = vrot.slane %v667_v29, %v1060_v7  ;;  %v707_v18 = vrot.slane %v670_v31, %v1060_v7 }
 0x32d   :  { %v729_v35 = vsel %vm728_vm11, %v703_v33, %v699_v32 }
 0x32e   :  { %v673_v36 = vpop.xlane.xlu1 %672  ;;  %v676_v37 = vpop.xlane.xlu0 %675  ;;  %v731_v41 = vsel %vm730_vm12, %v707_v18, %v729_v35 }
 0x32f   :  { %v711_v38 = vrot.slane %v673_v36, %v1060_v7  ;;  %v715_v42 = vrot.slane %v676_v37, %v1060_v7 }
 0x331   :  { %v733_v43 = vsel %vm732_vm13, %v711_v38, %v731_v41 }
 0x332   :  { %v679_v44 = vpop.xlane.xlu1 %678  ;;  %v682_v45 = vpop.xlane.xlu0 %681  ;;  %v735_v48 = vsel %vm734_vm14, %v715_v42, %v733_v43 }
 0x333   :  { %v719_v46 = vrot.slane %v679_v44, %v1060_v7  ;;  %v723_v49 = vrot.slane %v682_v45, %v1060_v7 }
 0x335   :  { %v737_v50 = vsel %vm736_vm15, %v719_v46, %v735_v48 }
 0x336   :  { %v685_v51 = vpop.xlane.xlu1 %684  ;;  %v739_v54 = vsel %vm738_vm0, %v723_v49, %v737_v50 }
 0x337   :  { %v727_v52 = vrot.slane %v685_v51, %v1060_v7 }
 0x339   :  { %v741_v55 = vsel %vm740_vm1, %v727_v52, %v739_v54 }
 0x33a   :  { %v743_v56 = vadd.f32 %v741_v55, %v687_v53 }
 0x33c   :  { %953 = vmatpush3.xpose.msk.msra.mxu1 %vm96_vm2, %v743_v56 }
 0x33f   :  { %955 = vmatmul.mubr.msk.f32.vlgmr.msra.gmra.mrb[14].mxu1 %vm96_vm2, %v1005_v30 }
 0x412   :  { %v816_v57 = vpop.f32.mrb[14].mxu1 }
 0x413   :  { %821 = vst.msk [vmem:[#allocation2] sm:$0x1] %vm820_vm3, %v816_v57  ;;  %v956_v58 = vpop.f32.mrb[15].mxu1 }
 0x414   :  { %988 = shalt.err (!%p985_p4)
}
 0x415   :  { %s989_s26 = scalar_lea.hbm %s1233_s7, 16 }
 0x416   :  { %p990_p5 = scmp.ne.s32.totalorder %s1233_s7, %s989_s26  ;;  %p993_p6 = scmp.lt.u32.totalorder %s989_s26, %s1233_s7 }
 0x418   :  { %p995_p7 = pnand %p993_p6, %p990_p5 }
 0x41a   :  { %998 = shalt.err (!%p995_p7)
}
 0x41b   :  { %831 = dma.vmem_to_hbm [thread:$0]  %s829_s21, 16, %s1233_s7, [#allocation3]  }
 0x41c   :  { %999 = dma.done.wait [#allocation3], 16  }
 0x41d   :  { %1000 = vsyncadd [#allocation3], 4294967280 }
 0x41e   :  { %835 = vsyncpa [#allocation3], 1 }

</bundles_post_ra>
